<compile_context>
chip_gen: v6e
topology: v6e:2x2x1
jax: 0.10.0
libtpu: 0.0.40
codegen_flags: <defaults>
</compile_context>

<pallas_src>
import jax
import jax.numpy as jnp
from jax.experimental import pallas as pl
from jax.experimental.pallas import tpu as pltpu


_IN_FEATURES = 10
_LANE = 128
_SUBLANE = 8


def _adversary_kernel(w_ref, b_ref, x_ref, o_ref):
    # w_ref: SMEM (IN,) f32, b_ref: SMEM (1,) f32    (scalar-prefetched)
    # x_ref: VMEM (IN, rt, 128) f32, o_ref: VMEM (rt, 128)
    n_in = x_ref.shape[0]                      # static (== 10)
    # Unrolled VPU MAC over the feature axis; each operand is a dense
    # (rt, 128) plane -> full sublane + lane occupancy per vreg.
    z = x_ref[0] * w_ref[0]
    for i in range(1, n_in):
        z = z + x_ref[i] * w_ref[i]
    z = z + b_ref[0]
    # Exact sigmoid (exp on EUP, exact divide); stays within 1e-5 tolerance
    # and is numerically safe for large |z|.
    o_ref[...] = (1.0 / (1.0 + jnp.exp(-z))).astype(o_ref.dtype)


def _round_up(n, m):
    return ((n + m - 1) // m) * m


def adversary_forward(x, weight, bias, *, rt_max=2048):
    """sigmoid(x @ weight.T + bias)  ==  Adversary.forward.

    x: (B, 10) f32, weight: (1, 10) f32 (torch layout), bias: (1,) f32.
    Returns (B, 1) f32.
    """
    B, n_in = x.shape
    assert weight.shape == (1, n_in) and bias.shape == (1,)

    # (B, 10) -> pad batch to a multiple of 128 -> feature-major (10, R, 128).
    # Single fused pad+transpose copy; the reshape splits the minor dim (free).
    bp = _round_up(max(B, 1), _LANE)
    r = bp // _LANE
    x_fm = jnp.pad(x, ((0, bp - B), (0, 0))).T.reshape(n_in, r, _LANE)

    # Tile the sublane-row axis R: big tiles amortize per-step overhead, but
    # keep ~8 grid steps when possible (v7x megacore sharding) and cap so
    # 2x(input tile)+2x(output tile) stays far below the VMEM budget.
    if r <= _SUBLANE:
        rt = r                                       # full dim (small batch)
    else:
        rt = min(rt_max, _round_up(pl.cdiv(r, 8), _SUBLANE))
    n_steps = pl.cdiv(r, rt)

    in_tile_bytes = n_in * rt * _LANE * 4
    out_tile_bytes = rt * _LANE * 4
    vmem_limit = min(
        64 * 1024 * 1024,
        max(16 * 1024 * 1024, 2 * (in_tile_bytes + out_tile_bytes) + (2 << 20)),
    )

    w_vec = weight.reshape(n_in).astype(jnp.float32)    # (10,) -> SMEM scalars
    b_vec = bias.reshape(1).astype(jnp.float32)         # (1,)  -> SMEM scalar

    out_r128 = pl.pallas_call(
        _adversary_kernel,
        out_shape=jax.ShapeDtypeStruct((r, _LANE), x.dtype),
        grid_spec=pltpu.PrefetchScalarGridSpec(
            num_scalar_prefetch=2,                       # weight + bias
            grid=(n_steps,),
            in_specs=[
                pl.BlockSpec((n_in, rt, _LANE), lambda i, w, b: (0, i, 0)),
            ],
            out_specs=pl.BlockSpec((rt, _LANE), lambda i, w, b: (i, 0)),
        ),
        compiler_params=pltpu.CompilerParams(
            dimension_semantics=("parallel",),           # megacore-shardable
            vmem_limit_bytes=vmem_limit,
        ),
    )(w_vec, b_vec, x_fm)

    # Back to the module's (B, 1) output layout (wrapper-side plumbing only).
    return out_r128.reshape(-1)[:B].reshape(B, 1)


def init_params(key):
    """Deterministic init matching the module's __init__.

    layer1.weight: (1, 10), kaiming_uniform_(nonlinearity='sigmoid')
      -> gain = 1, fan_in = 10, bound = sqrt(3 / fan_in)
    layer1.bias:   (1,), default nn.Linear init: U(-1/sqrt(fan_in), 1/sqrt(fan_in))
    """
    k_w, k_b = jax.random.split(key)
    fan_in = _IN_FEATURES
    w_bound = (3.0 / fan_in) ** 0.5
    b_bound = 1.0 / (fan_in ** 0.5)
    weight = jax.random.uniform(k_w, (1, fan_in), jnp.float32, -w_bound, w_bound)
    bias = jax.random.uniform(k_b, (1,), jnp.float32, -b_bound, b_bound)
    return weight, bias


if __name__ == "__main__":
    key = jax.random.PRNGKey(0)
    k_params, k_x = jax.random.split(key)

    weight, bias = init_params(k_params)
    x = jax.random.normal(k_x, (8, _IN_FEATURES), jnp.float32)   # batch = 8

    fwd = jax.jit(adversary_forward)   # fuses the pad+transpose relayout
    out = jax.block_until_ready(fwd(x, weight, bias))

    # sanity check against pure-JAX reference
    ref = jax.nn.sigmoid(x @ weight.T + bias)
    assert out.shape == (8, 1)
    assert jnp.allclose(out, ref, atol=1e-5, rtol=1e-5)

    print("KERNEL_OK")
</pallas_src>

<mosaic_0001>
module attributes {stable_mosaic.version = 11 : i64} {
  func.func @_adversary_kernel(%arg0: i32, %arg1: memref<10xf32, #tpu.memory_space<smem>>, %arg2: memref<1xf32, #tpu.memory_space<smem>>, %arg3: memref<10x1x128xf32, #tpu.memory_space<vmem>>, %arg4: memref<1x128xf32, #tpu.memory_space<vmem>>) attributes {dimension_semantics = [#tpu.dimension_semantics<parallel>], iteration_bounds = array<i64: 1>, scalar_prefetch = 2 : i64, scratch_operands = 0 : i64, tpu.core_type = #tpu.core_type<tc>, window_params = [{transform_indices = @transform_0, window_bounds = array<i64: 10, 1, 128>}, {transform_indices = @transform_1, window_bounds = array<i64: 1, 128>}]} {
    %c0 = arith.constant 0 : index
    %c0_0 = arith.constant 0 : index
    %c0_1 = arith.constant 0 : index
    %0 = vector.load %arg3[%c0, %c0_0, %c0_1] : memref<10x1x128xf32, #tpu.memory_space<vmem>>, vector<1x1x128xf32>
    %1 = vector.shape_cast %0 : vector<1x1x128xf32> to vector<1x128xf32>
    %c0_2 = arith.constant 0 : index
    %2 = memref.load %arg1[%c0_2] : memref<10xf32, #tpu.memory_space<smem>>
    %3 = vector.broadcast %2 : f32 to vector<1x128xf32>
    %4 = arith.mulf %1, %3 : vector<1x128xf32>
    %c1 = arith.constant 1 : index
    %c0_3 = arith.constant 0 : index
    %c0_4 = arith.constant 0 : index
    %5 = vector.load %arg3[%c1, %c0_3, %c0_4] : memref<10x1x128xf32, #tpu.memory_space<vmem>>, vector<1x1x128xf32>
    %6 = vector.shape_cast %5 : vector<1x1x128xf32> to vector<1x128xf32>
    %c1_5 = arith.constant 1 : index
    %7 = memref.load %arg1[%c1_5] : memref<10xf32, #tpu.memory_space<smem>>
    %8 = vector.broadcast %7 : f32 to vector<1x128xf32>
    %9 = arith.mulf %6, %8 : vector<1x128xf32>
    %10 = arith.addf %4, %9 : vector<1x128xf32>
    %c2 = arith.constant 2 : index
    %c0_6 = arith.constant 0 : index
    %c0_7 = arith.constant 0 : index
    %11 = vector.load %arg3[%c2, %c0_6, %c0_7] : memref<10x1x128xf32, #tpu.memory_space<vmem>>, vector<1x1x128xf32>
    %12 = vector.shape_cast %11 : vector<1x1x128xf32> to vector<1x128xf32>
    %c2_8 = arith.constant 2 : index
    %13 = memref.load %arg1[%c2_8] : memref<10xf32, #tpu.memory_space<smem>>
    %14 = vector.broadcast %13 : f32 to vector<1x128xf32>
    %15 = arith.mulf %12, %14 : vector<1x128xf32>
    %16 = arith.addf %10, %15 : vector<1x128xf32>
    %c3 = arith.constant 3 : index
    %c0_9 = arith.constant 0 : index
    %c0_10 = arith.constant 0 : index
    %17 = vector.load %arg3[%c3, %c0_9, %c0_10] : memref<10x1x128xf32, #tpu.memory_space<vmem>>, vector<1x1x128xf32>
    %18 = vector.shape_cast %17 : vector<1x1x128xf32> to vector<1x128xf32>
    %c3_11 = arith.constant 3 : index
    %19 = memref.load %arg1[%c3_11] : memref<10xf32, #tpu.memory_space<smem>>
    %20 = vector.broadcast %19 : f32 to vector<1x128xf32>
    %21 = arith.mulf %18, %20 : vector<1x128xf32>
    %22 = arith.addf %16, %21 : vector<1x128xf32>
    %c4 = arith.constant 4 : index
    %c0_12 = arith.constant 0 : index
    %c0_13 = arith.constant 0 : index
    %23 = vector.load %arg3[%c4, %c0_12, %c0_13] : memref<10x1x128xf32, #tpu.memory_space<vmem>>, vector<1x1x128xf32>
    %24 = vector.shape_cast %23 : vector<1x1x128xf32> to vector<1x128xf32>
    %c4_14 = arith.constant 4 : index
    %25 = memref.load %arg1[%c4_14] : memref<10xf32, #tpu.memory_space<smem>>
    %26 = vector.broadcast %25 : f32 to vector<1x128xf32>
    %27 = arith.mulf %24, %26 : vector<1x128xf32>
    %28 = arith.addf %22, %27 : vector<1x128xf32>
    %c5 = arith.constant 5 : index
    %c0_15 = arith.constant 0 : index
    %c0_16 = arith.constant 0 : index
    %29 = vector.load %arg3[%c5, %c0_15, %c0_16] : memref<10x1x128xf32, #tpu.memory_space<vmem>>, vector<1x1x128xf32>
    %30 = vector.shape_cast %29 : vector<1x1x128xf32> to vector<1x128xf32>
    %c5_17 = arith.constant 5 : index
    %31 = memref.load %arg1[%c5_17] : memref<10xf32, #tpu.memory_space<smem>>
    %32 = vector.broadcast %31 : f32 to vector<1x128xf32>
    %33 = arith.mulf %30, %32 : vector<1x128xf32>
    %34 = arith.addf %28, %33 : vector<1x128xf32>
    %c6 = arith.constant 6 : index
    %c0_18 = arith.constant 0 : index
    %c0_19 = arith.constant 0 : index
    %35 = vector.load %arg3[%c6, %c0_18, %c0_19] : memref<10x1x128xf32, #tpu.memory_space<vmem>>, vector<1x1x128xf32>
    %36 = vector.shape_cast %35 : vector<1x1x128xf32> to vector<1x128xf32>
    %c6_20 = arith.constant 6 : index
    %37 = memref.load %arg1[%c6_20] : memref<10xf32, #tpu.memory_space<smem>>
    %38 = vector.broadcast %37 : f32 to vector<1x128xf32>
    %39 = arith.mulf %36, %38 : vector<1x128xf32>
    %40 = arith.addf %34, %39 : vector<1x128xf32>
    %c7 = arith.constant 7 : index
    %c0_21 = arith.constant 0 : index
    %c0_22 = arith.constant 0 : index
    %41 = vector.load %arg3[%c7, %c0_21, %c0_22] : memref<10x1x128xf32, #tpu.memory_space<vmem>>, vector<1x1x128xf32>
    %42 = vector.shape_cast %41 : vector<1x1x128xf32> to vector<1x128xf32>
    %c7_23 = arith.constant 7 : index
    %43 = memref.load %arg1[%c7_23] : memref<10xf32, #tpu.memory_space<smem>>
    %44 = vector.broadcast %43 : f32 to vector<1x128xf32>
    %45 = arith.mulf %42, %44 : vector<1x128xf32>
    %46 = arith.addf %40, %45 : vector<1x128xf32>
    %c8 = arith.constant 8 : index
    %c0_24 = arith.constant 0 : index
    %c0_25 = arith.constant 0 : index
    %47 = vector.load %arg3[%c8, %c0_24, %c0_25] : memref<10x1x128xf32, #tpu.memory_space<vmem>>, vector<1x1x128xf32>
    %48 = vector.shape_cast %47 : vector<1x1x128xf32> to vector<1x128xf32>
    %c8_26 = arith.constant 8 : index
    %49 = memref.load %arg1[%c8_26] : memref<10xf32, #tpu.memory_space<smem>>
    %50 = vector.broadcast %49 : f32 to vector<1x128xf32>
    %51 = arith.mulf %48, %50 : vector<1x128xf32>
    %52 = arith.addf %46, %51 : vector<1x128xf32>
    %c9 = arith.constant 9 : index
    %c0_27 = arith.constant 0 : index
    %c0_28 = arith.constant 0 : index
    %53 = vector.load %arg3[%c9, %c0_27, %c0_28] : memref<10x1x128xf32, #tpu.memory_space<vmem>>, vector<1x1x128xf32>
    %54 = vector.shape_cast %53 : vector<1x1x128xf32> to vector<1x128xf32>
    %c9_29 = arith.constant 9 : index
    %55 = memref.load %arg1[%c9_29] : memref<10xf32, #tpu.memory_space<smem>>
    %56 = vector.broadcast %55 : f32 to vector<1x128xf32>
    %57 = arith.mulf %54, %56 : vector<1x128xf32>
    %58 = arith.addf %52, %57 : vector<1x128xf32>
    %c0_30 = arith.constant 0 : index
    %59 = memref.load %arg2[%c0_30] : memref<1xf32, #tpu.memory_space<smem>>
    %60 = vector.broadcast %59 : f32 to vector<1x128xf32>
    %61 = arith.addf %58, %60 : vector<1x128xf32>
    %cst = arith.constant 0.000000e+00 : f32
    %62 = vector.broadcast %cst : f32 to vector<1x128xf32>
    %63 = arith.subf %62, %61 : vector<1x128xf32>
    %64 = math.exp %63 : vector<1x128xf32>
    %cst_31 = arith.constant 1.000000e+00 : f32
    %65 = vector.broadcast %cst_31 : f32 to vector<1x128xf32>
    %66 = arith.addf %65, %64 : vector<1x128xf32>
    %cst_32 = arith.constant 1.000000e+00 : f32
    %67 = vector.broadcast %cst_32 : f32 to vector<1x128xf32>
    %68 = arith.divf %67, %66 : vector<1x128xf32>
    %c0_33 = arith.constant 0 : index
    %c0_34 = arith.constant 0 : index
    %69 = vector.load %arg4[%c0_33, %c0_34] : memref<1x128xf32, #tpu.memory_space<vmem>>, vector<1x128xf32>
    tpu.vector_store %arg4[%c0_33, %c0_34], %68 {strides = array<i32>} : memref<1x128xf32, #tpu.memory_space<vmem>>, vector<1x128xf32>,
    return
  }
  func.func @transform_0(%arg0: i32, %arg1: memref<10xf32, #tpu.memory_space<smem>>, %arg2: memref<1xf32, #tpu.memory_space<smem>>) -> (i32, i32, i32) {
    %c0_i32 = arith.constant 0 : i32
    %c0_i32_0 = arith.constant 0 : i32
    %c0_i32_1 = arith.constant 0 : i32
    return %c0_i32, %arg0, %c0_i32_0 : i32, i32, i32
  }
  func.func @transform_1(%arg0: i32, %arg1: memref<10xf32, #tpu.memory_space<smem>>, %arg2: memref<1xf32, #tpu.memory_space<smem>>) -> (i32, i32) {
    %c0_i32 = arith.constant 0 : i32
    %c0_i32_0 = arith.constant 0 : i32
    return %arg0, %c0_i32 : i32, i32
  }
}

</mosaic_0001>

<bundles_post_ra>
// kernel: adversary_forward.1
= control target key start
LH: loop header
LB: loop body
LE: loop exit
PB: predicated region body
PF: predicated region fallthrough
CT: control target
= control target key end

     0   :  { %s186_s0 = inlined_call_operand.vmem [shape: f32[10], index: 0, kind: input, shape index: {}]   ;;  %s187_s1 = inlined_call_operand.<no memory space> [shape: f32[1], index: 1, kind: input, shape index: {}]   ;;  %s188_s2 = inlined_call_operand.vmem [shape: f32[10,1,128], index: 2, kind: input, shape index: {}]   ;;  %s189_s3 = inlined_call_operand.vmem [shape: f32[1,128], index: 3, kind: output, shape index: {}]  }
   0x1   :  { %s8_s14 = sshll.u32 %s186_s0, 4  ;;  %s9_s14 = int_to_ptr.vmem [resolvable:$true] %s8_s14 }
   0x2   :  { %s112_s15 = scalar_lea.vmem %s9_s14, 16  ;;  %p117_p1 = scmp.lt.s32.totalorder %s9_s14, %s9_s14 }
   0x3   :  { %p113_p0 = scmp.ne.s32.totalorder %s9_s14, %s112_s15  ;;  %p118_p2 = scmp.lt.s32.totalorder %s112_s15, %s112_s15 }
   0x5   :  { %p119_p3 = por %p118_p2, %p117_p1 }
   0x7   :  { %p120_p4 = pnand %p119_p3, %p113_p0 }
   0x9   :  { %123 = shalt.err (!%p120_p4)  }
   0xa   :  { %s126_s16 = smov [#allocation3]  }
   0xb   :  { %11 = dma.vmem_to_smem %s9_s14, 16, %s126_s16, [#allocation2] }
   0xc   :  { %124 = dma.done.wait [#allocation2], 16 }
   0xd   :  { %125 = vsyncadd [#allocation2], 4294967280 }
   0xe   :  { %14 = sfence }
   0xf   :  { %s18_s17 = sld [smem:[#allocation3]]  ;;  %v17_v0 = vld [vmem:[%s188_s2] sm:$0x1]  ;;  %v89_v1 = vld [vmem:[%s188_s2 + $0x1] sm:$0x1]  ;;  %v76_v38 = vstv %s187_s1 }
  0x10   :  { %s90_s18 = sld [smem:[#allocation3 + $0x1]]  ;;  %v91_v3 = vld [vmem:[%s188_s2 + $0x2] sm:$0x1]  ;;  %v93_v6 = vld [vmem:[%s188_s2 + $0x3] sm:$0x1] }
  0x11   :  { %s92_s19 = sld [smem:[#allocation3 + $0x2]]  ;;  %v95_v11 = vld [vmem:[%s188_s2 + $0x4] sm:$0x1]  ;;  %v97_v15 = vld [vmem:[%s188_s2 + $0x5] sm:$0x1] }
  0x12   :  { %s94_s20 = sld [smem:[#allocation3 + $0x3]]  ;;  %v99_v19 = vld [vmem:[%s188_s2 + $0x6] sm:$0x1]  ;;  %v101_v23 = vld [vmem:[%s188_s2 + $0x7] sm:$0x1] }
  0x13   :  { %s96_s0 = sld [smem:[#allocation3 + $0x4]]  ;;  %v103_v27 = vld [vmem:[%s188_s2 + $0x8] sm:$0x1]  ;;  %v105_v31 = vld [vmem:[%s188_s2 + $0x9] sm:$0x1] }
  0x14   :  { %s98_s25 = sld [smem:[#allocation3 + $0x5]] }
  0x15   :  { %v19_v2 = vstv %s18_s17  ;;  %s100_s28 = sld [smem:[#allocation3 + $0x6]] }
  0x16   :  { %v20_v4 = vmul.f32 %v19_v2, %v17_v0  ;;  %v24_v5 = vstv %s90_s18  ;;  %s102_s4 = sld [smem:[#allocation3 + $0x7]] }
  0x17   :  { %v25_v7 = vmul.f32 %v89_v1, %v24_v5  ;;  %v30_v8 = vstv %s92_s19  ;;  %s104_s7 = sld [smem:[#allocation3 + $0x8]] }
  0x18   :  { %v31_v9 = vmul.f32 %v91_v3, %v30_v8  ;;  %v36_v10 = vstv %s94_s20  ;;  %s106_s10 = sld [smem:[#allocation3 + $0x9]] }
  0x19   :  { %v26_v12 = vadd.f32 %v25_v7, %v20_v4  ;;  %v37_v13 = vmul.f32 %v93_v6, %v36_v10  ;;  %v42_v14 = vstv %s96_s0 }
  0x1a   :  { %v48_v16 = vstv %s98_s25  ;;  %v43_v18 = vmul.f32 %v95_v11, %v42_v14 }
  0x1b   :  { %v32_v17 = vadd.f32 %v31_v9, %v26_v12  ;;  %v54_v20 = vstv %s100_s28  ;;  %v49_v22 = vmul.f32 %v97_v15, %v48_v16 }
  0x1c   :  { %v60_v24 = vstv %s102_s4  ;;  %v55_v26 = vmul.f32 %v99_v19, %v54_v20 }
  0x1d   :  { %v38_v21 = vadd.f32 %v37_v13, %v32_v17  ;;  %v66_v28 = vstv %s104_s7  ;;  %v61_v30 = vmul.f32 %v101_v23, %v60_v24 }
  0x1e   :  { %v72_v32 = vstv %s106_s10  ;;  %v67_v34 = vmul.f32 %v103_v27, %v66_v28 }
  0x1f   :  { %v44_v25 = vadd.f32 %v43_v18, %v38_v21  ;;  %v73_v36 = vmul.f32 %v105_v31, %v72_v32 }
  0x21   :  { %v50_v29 = vadd.f32 %v49_v22, %v44_v25 }
  0x23   :  { %v56_v33 = vadd.f32 %v55_v26, %v50_v29 }
  0x25   :  { %v62_v35 = vadd.f32 %v61_v30, %v56_v33 }
  0x27   :  { %v68_v37 = vadd.f32 %v67_v34, %v62_v35 }
  0x29   :  { %v74_v39 = vadd.f32 %v73_v36, %v68_v37 }
  0x2b   :  { %v77_v40 = vadd.f32 %v76_v38, %v74_v39 }
  0x2d   :  { %v78_v41 = vsub.f32 0.0, %v77_v40 }
  0x2f   :  { %v79_v42 = vmul.f32 1.442695, %v78_v41 }
  0x31   :  { %108 = vpow2.f32 %v79_v42 }
  0x3e   :  { %v109_v43 = vpop.eup %108 }
  0x3f   :  { %v81_v44 = vadd.f32 1.0, %v109_v43 }
  0x41   :  { %110 = vrcp.f32 %v81_v44 }
  0x4e   :  { %v111_v45 = vpop.eup %110 }
  0x4f   :  { %84 = vst [vmem:[%s189_s3] sm:$0x1] %v111_v45 }

</bundles_post_ra>
